<compile_context>
chip_gen: v6e
topology: v6e:2x2x1
jax: 0.10.0
libtpu: 0.0.40
codegen_flags: <defaults>
</compile_context>

<pallas_src>
import jax
import jax.numpy as jnp
from jax.experimental import pallas as pl
from jax.experimental.pallas import tpu as pltpu


# --------------------------------- kernel ------------------------------------

def _exclude_cls_ff_kernel(x_ref, w1_ref, b1_ref, w2_ref, b2_ref, o_ref):
    # x_ref / o_ref: (TB, N, D)   w1: (D, H)  b1: (1, H)  w2: (H, D)  b2: (1, D)
    tb, n, d = x_ref.shape

    x_blk = x_ref[...]                                   # one full-block load
    flat = x_blk.reshape(tb * n, d)                      # tall 2-D matmul, M = TB*N

    h = jnp.dot(flat, w1_ref[...], preferred_element_type=jnp.float32)
    h = h + b1_ref[...]                                  # (1, H) broadcasts
    h = jax.nn.gelu(h, approximate=True)                 # tanh -> EUP slot
    if x_blk.dtype != jnp.float32:
        # keep the second matmul in the narrow activation dtype (bf16 nets);
        # f32 accumulation is preserved by preferred_element_type below.
        h = h.astype(x_blk.dtype)

    y = jnp.dot(h, w2_ref[...], preferred_element_type=jnp.float32)
    y = y + b2_ref[...]                                  # (1, D) broadcasts
    y = y.reshape(tb, n, d).astype(o_ref.dtype)

    # Single full-block store; sequence row 0 (CLS) is selected from the input
    # so it passes through bit-exactly.  Computing the FF on the CLS row too is
    # 1/N extra work — negligible — and buys dense, unmasked loads/stores.
    row = jax.lax.broadcasted_iota(jnp.int32, (tb, n, d), 1)
    o_ref[...] = jnp.where(row == 0, x_blk, y)


# ------------------------------ tiling planner --------------------------------

def _vmem_capacity_bytes():
    try:
        return int(pltpu.get_tpu_info().vmem_capacity_bytes)
    except Exception:
        return 64 * 1024 * 1024          # conservative: v7x per-TensorCore VMEM


def _plan_tiling(B, N, D, H, act_bytes, w_bytes):
    """Pick the batch tile `tb` and a matching vmem_limit from the real working set."""
    vmem_cap = _vmem_capacity_bytes()
    budget = int(vmem_cap * 0.70)        # leave compiler-scratch / spill headroom

    # Resident weights (constant index_map); assume default double-buffering.
    weight_bytes = 2 * (D * H + H + H * D + D) * w_bytes
    # Per batch-row working set inside one grid step.
    per_row = (4 * N * D * act_bytes     # in + out blocks, double-buffered
               + N * H * 4               # f32 hidden activation
               + N * H * act_bytes       # hidden re-cast for 2nd matmul
               + N * D * 4)              # f32 output before final cast

    avail = max(budget - weight_bytes, per_row)
    tb = int(max(1, min(B, avail // per_row)))

    # Keep >=2 grid steps when possible: DMA/compute overlap on every chip and
    # both TensorCores busy on v7x (the grid axis is "parallel").
    if B >= 2:
        tb = min(tb, pl.cdiv(B, 2))
    # Prefer an even step count so v7x's 2 TCs split the axis evenly.
    steps = pl.cdiv(B, tb)
    if steps > 1 and steps % 2 == 1:
        tb = max(1, pl.cdiv(B, steps + 1))

    vmem_need = weight_bytes + tb * per_row
    vmem_limit = min(int(vmem_cap * 0.85), max(vmem_need + (8 << 20), 32 << 20))
    return tb, vmem_limit


# --------------------------------- wrapper ------------------------------------

def exclude_cls_feedforward(x, w1, b1, w2, b2):
    """x: (B, N, D) with token 0 = CLS.  Returns (B, N, D)."""
    B, N, D = x.shape
    H = w1.shape[1]
    act_bytes = jnp.dtype(x.dtype).itemsize
    w_bytes = jnp.dtype(w1.dtype).itemsize
    tb, vmem_limit = _plan_tiling(B, N, D, H, act_bytes, w_bytes)
    grid = (pl.cdiv(B, tb),)

    cost = pl.CostEstimate(
        flops=4 * B * N * D * H,                   # two matmuls over all N tokens
        transcendentals=B * N * H,                 # gelu tanh
        bytes_accessed=(2 * B * N * D * act_bytes
                        + (D * H + H + H * D + D) * w_bytes),
    )

    return pl.pallas_call(
        _exclude_cls_ff_kernel,
        out_shape=jax.ShapeDtypeStruct((B, N, D), x.dtype),
        grid_spec=pltpu.PrefetchScalarGridSpec(
            num_scalar_prefetch=0,
            grid=grid,
            in_specs=[
                pl.BlockSpec((tb, N, D), lambda b: (b, 0, 0)),   # activations
                pl.BlockSpec((D, H), lambda b: (0, 0)),          # w1 (VMEM-resident)
                pl.BlockSpec((1, H), lambda b: (0, 0)),          # b1 (VMEM-resident)
                pl.BlockSpec((H, D), lambda b: (0, 0)),          # w2 (VMEM-resident)
                pl.BlockSpec((1, D), lambda b: (0, 0)),          # b2 (VMEM-resident)
            ],
            out_specs=pl.BlockSpec((tb, N, D), lambda b: (b, 0, 0)),
        ),
        compiler_params=pltpu.CompilerParams(
            dimension_semantics=("parallel",),
            vmem_limit_bytes=vmem_limit,
        ),
        cost_estimate=cost,
    )(x, w1, b1, w2, b2)


# ----------------------------- pure-JAX reference -----------------------------

def _feed_forward_ref(x, w1, b1, w2, b2):
    h = jax.nn.gelu(x @ w1 + b1[0], approximate=True)
    return h @ w2 + b2[0]


def _exclude_cls_ref(x, w1, b1, w2, b2):
    cls_tok, rest = x[:, :1], x[:, 1:]
    return jnp.concatenate([cls_tok, _feed_forward_ref(rest, w1, b1, w2, b2)], axis=1)


if __name__ == "__main__":
    # Small but lane-dense demo shapes (D, H multiples of 128).
    B, N, D, H = 4, 9, 128, 256          # N = 1 CLS token + 8 sequence tokens
    key = jax.random.PRNGKey(0)
    kx, k1, k2, k3, k4 = jax.random.split(key, 5)
    x = jax.random.normal(kx, (B, N, D), dtype=jnp.float32)
    w1 = jax.random.normal(k1, (D, H), dtype=jnp.float32) / jnp.sqrt(D)
    b1 = jax.random.normal(k2, (1, H), dtype=jnp.float32) * 0.1
    w2 = jax.random.normal(k3, (H, D), dtype=jnp.float32) / jnp.sqrt(H)
    b2 = jax.random.normal(k4, (1, D), dtype=jnp.float32) * 0.1

    out = exclude_cls_feedforward(x, w1, b1, w2, b2)
    out = jax.block_until_ready(out)

    ref = _exclude_cls_ref(x, w1, b1, w2, b2)
    assert out.shape == (B, N, D), out.shape
    # CLS row must pass through bit-exactly.
    assert jnp.array_equal(out[:, :1], x[:, :1]), "CLS passthrough mismatch"
    # fn(rest): allow small MXU-precision differences vs the XLA reference.
    assert jnp.allclose(out[:, 1:], ref[:, 1:], atol=2e-2, rtol=2e-2), "fn(rest) mismatch"

    print("KERNEL_OK")
</pallas_src>

<mosaic_0001>
module attributes {stable_mosaic.version = 11 : i64} {
  func.func @_exclude_cls_ff_kernel(%arg0: i32, %arg1: memref<2x9x128xf32, #tpu.memory_space<vmem>>, %arg2: memref<128x256xf32, #tpu.memory_space<vmem>>, %arg3: memref<1x256xf32, #tpu.memory_space<vmem>>, %arg4: memref<256x128xf32, #tpu.memory_space<vmem>>, %arg5: memref<1x128xf32, #tpu.memory_space<vmem>>, %arg6: memref<2x9x128xf32, #tpu.memory_space<vmem>>) attributes {dimension_semantics = [#tpu.dimension_semantics<parallel>], iteration_bounds = array<i64: 2>, scalar_prefetch = 0 : i64, scratch_operands = 0 : i64, tpu.core_type = #tpu.core_type<tc>, window_params = [{transform_indices = @transform_0, window_bounds = array<i64: 2, 9, 128>}, {pipeline_mode = #tpu.pipeline_mode<synchronous>, transform_indices = @transform_1, window_bounds = array<i64: 128, 256>}, {pipeline_mode = #tpu.pipeline_mode<synchronous>, transform_indices = @transform_2, window_bounds = array<i64: 1, 256>}, {pipeline_mode = #tpu.pipeline_mode<synchronous>, transform_indices = @transform_3, window_bounds = array<i64: 256, 128>}, {pipeline_mode = #tpu.pipeline_mode<synchronous>, transform_indices = @transform_4, window_bounds = array<i64: 1, 128>}, {transform_indices = @transform_5, window_bounds = array<i64: 2, 9, 128>}]} {
    %c0 = arith.constant 0 : index
    %c0_0 = arith.constant 0 : index
    %c0_1 = arith.constant 0 : index
    %0 = vector.load %arg1[%c0, %c0_0, %c0_1] : memref<2x9x128xf32, #tpu.memory_space<vmem>>, vector<2x9x128xf32>
    %1 = vector.shape_cast %0 : vector<2x9x128xf32> to vector<18x128xf32>
    %c0_2 = arith.constant 0 : index
    %c0_3 = arith.constant 0 : index
    %2 = vector.load %arg2[%c0_2, %c0_3] : memref<128x256xf32, #tpu.memory_space<vmem>>, vector<128x256xf32>
    %cst = arith.constant dense<0.000000e+00> : vector<18x256xf32>
    %3 = tpu.matmul %1, %2, %cst {dimension_numbers = #tpu.dot_dimension_numbers<[1], [0], [0], [1], [0, 0, 1, 1], [], []>} : vector<18x128xf32>, vector<128x256xf32>, vector<18x256xf32> -> vector<18x256xf32>
    %c0_4 = arith.constant 0 : index
    %c0_5 = arith.constant 0 : index
    %4 = vector.load %arg3[%c0_4, %c0_5] : memref<1x256xf32, #tpu.memory_space<vmem>>, vector<1x256xf32>
    %5 = vector.broadcast %4 : vector<1x256xf32> to vector<18x256xf32>
    %6 = arith.addf %3, %5 : vector<18x256xf32>
    %7 = arith.mulf %6, %6 : vector<18x256xf32>
    %8 = arith.mulf %6, %7 : vector<18x256xf32>
    %cst_6 = arith.constant 4.471500e-02 : f32
    %9 = vector.broadcast %cst_6 : f32 to vector<18x256xf32>
    %10 = arith.mulf %9, %8 : vector<18x256xf32>
    %11 = arith.addf %6, %10 : vector<18x256xf32>
    %cst_7 = arith.constant 0.797884583 : f32
    %12 = vector.broadcast %cst_7 : f32 to vector<18x256xf32>
    %13 = arith.mulf %12, %11 : vector<18x256xf32>
    %14 = math.tanh %13 : vector<18x256xf32>
    %cst_8 = arith.constant 1.000000e+00 : f32
    %15 = vector.broadcast %cst_8 : f32 to vector<18x256xf32>
    %16 = arith.addf %15, %14 : vector<18x256xf32>
    %cst_9 = arith.constant 5.000000e-01 : f32
    %17 = vector.broadcast %cst_9 : f32 to vector<18x256xf32>
    %18 = arith.mulf %17, %16 : vector<18x256xf32>
    %19 = arith.mulf %6, %18 : vector<18x256xf32>
    %c0_10 = arith.constant 0 : index
    %c0_11 = arith.constant 0 : index
    %20 = vector.load %arg4[%c0_10, %c0_11] : memref<256x128xf32, #tpu.memory_space<vmem>>, vector<256x128xf32>
    %cst_12 = arith.constant dense<0.000000e+00> : vector<18x128xf32>
    %21 = tpu.matmul %19, %20, %cst_12 {dimension_numbers = #tpu.dot_dimension_numbers<[1], [0], [0], [1], [0, 0, 1, 1], [], []>} : vector<18x256xf32>, vector<256x128xf32>, vector<18x128xf32> -> vector<18x128xf32>
    %c0_13 = arith.constant 0 : index
    %c0_14 = arith.constant 0 : index
    %22 = vector.load %arg5[%c0_13, %c0_14] : memref<1x128xf32, #tpu.memory_space<vmem>>, vector<1x128xf32>
    %23 = vector.broadcast %22 : vector<1x128xf32> to vector<18x128xf32>
    %24 = arith.addf %21, %23 : vector<18x128xf32>
    %25 = vector.shape_cast %24 : vector<18x128xf32> to vector<2x9x128xf32>
    %26 = tpu.iota {dimensions = array<i32: 1>} : vector<2x9x128xi32>
    %c0_i32 = arith.constant 0 : i32
    %27 = vector.broadcast %c0_i32 : i32 to vector<2x9x128xi32>
    %28 = arith.cmpi eq, %26, %27 : vector<2x9x128xi32>
    %29 = arith.select %28, %0, %25 : vector<2x9x128xi1>, vector<2x9x128xf32>
    %c0_15 = arith.constant 0 : index
    %c0_16 = arith.constant 0 : index
    %c0_17 = arith.constant 0 : index
    %30 = vector.load %arg6[%c0_15, %c0_16, %c0_17] : memref<2x9x128xf32, #tpu.memory_space<vmem>>, vector<2x9x128xf32>
    tpu.vector_store %arg6[%c0_15, %c0_16, %c0_17], %29 {strides = array<i32>} : memref<2x9x128xf32, #tpu.memory_space<vmem>>, vector<2x9x128xf32>,
    return
  }
  func.func @transform_0(%arg0: i32) -> (i32, i32, i32) {
    %c0_i32 = arith.constant 0 : i32
    %c0_i32_0 = arith.constant 0 : i32
    %c0_i32_1 = arith.constant 0 : i32
    return %arg0, %c0_i32, %c0_i32_0 : i32, i32, i32
  }
  func.func @transform_1(%arg0: i32) -> (i32, i32) {
    %c0_i32 = arith.constant 0 : i32
    %c0_i32_0 = arith.constant 0 : i32
    %c0_i32_1 = arith.constant 0 : i32
    return %c0_i32, %c0_i32_0 : i32, i32
  }
  func.func @transform_2(%arg0: i32) -> (i32, i32) {
    %c0_i32 = arith.constant 0 : i32
    %c0_i32_0 = arith.constant 0 : i32
    %c0_i32_1 = arith.constant 0 : i32
    return %c0_i32, %c0_i32_0 : i32, i32
  }
  func.func @transform_3(%arg0: i32) -> (i32, i32) {
    %c0_i32 = arith.constant 0 : i32
    %c0_i32_0 = arith.constant 0 : i32
    %c0_i32_1 = arith.constant 0 : i32
    return %c0_i32, %c0_i32_0 : i32, i32
  }
  func.func @transform_4(%arg0: i32) -> (i32, i32) {
    %c0_i32 = arith.constant 0 : i32
    %c0_i32_0 = arith.constant 0 : i32
    %c0_i32_1 = arith.constant 0 : i32
    return %c0_i32, %c0_i32_0 : i32, i32
  }
  func.func @transform_5(%arg0: i32) -> (i32, i32, i32) {
    %c0_i32 = arith.constant 0 : i32
    %c0_i32_0 = arith.constant 0 : i32
    %c0_i32_1 = arith.constant 0 : i32
    return %arg0, %c0_i32, %c0_i32_0 : i32, i32, i32
  }
}

</mosaic_0001>

<bundles_post_ra>
// kernel: tpu_custom_call.1
= control target key start
LH: loop header
LB: loop body
LE: loop exit
PB: predicated region body
PF: predicated region fallthrough
CT: control target
= control target key end

     0   :  { %10 = vsyncpa [#allocation3], 0  ;;  %s1557_s0 = inlined_call_operand.vmem [shape: f32[4,9,128], index: 0, kind: input, shape index: {}]   ;;  %s1558_s1 = inlined_call_operand.hbm [shape: f32[128,256], index: 1, kind: input, shape index: {}]   ;;  %s1559_s2 = inlined_call_operand.vmem [shape: f32[1,256], index: 2, kind: input, shape index: {}]   ;;  %s1560_s3 = inlined_call_operand.hbm [shape: f32[256,128], index: 3, kind: input, shape index: {}]   ;;  %s1561_s4 = inlined_call_operand.vmem [shape: f32[1,128], index: 4, kind: input, shape index: {}]   ;;  %s1562_s5 = inlined_call_operand.vmem [shape: f32[4,9,128], index: 5, kind: output, shape index: {}]  }
   0x1   :  { %11 = vsyncpa [#allocation5], 0  ;;  %s1383_s18 = smov 0  }
   0x2 LB: > { %s1345_s19 = smov [#allocation2]   ;;  %s1159_s21 = sadd.s32 4294967295, %s1343_s18   ;;  %s1343_s18 = sphi %s1383_s18, %s17_s18  }
   0x3   : > { %s170_s20 = sshll.u32 %s1345_s19, 4  ;;  %p1161_p0 = scmp.ge.s32.totalorder %s1343_s18, 1  ;;  %s171_s20 = int_to_ptr.vmem [resolvable:$true] %s170_s20 }
   0x4   : > { %p158_p1 = scmp.lt.s32.totalorder %s1343_s18, 3  ;;  %p1397_p3 = scmp.eq.s32.totalorder %s1159_s21, 0 }
   0x5   : > { %s1346_s24 = smov [#allocation4]   ;;  %s1288_s27 = scalar_lea.vmem %s171_s20, 4096 }
   0x6   : > { %p1391_p2 = pnand %p1161_p0, %p158_p1  ;;  %s186_s25 = sshll.u32 %s1346_s24, 4  ;;  %s187_s25 = int_to_ptr.vmem [resolvable:$true] %s186_s25 }
   0x7   : > { %p1289_p7 = scmp.ne.s32.totalorder %s171_s20, %s1288_s27  ;;  %p1296_p10 = scmp.lt.s32.totalorder %s171_s20, %s171_s20 }
   0x8   : > { %p1236_p4 = pneg %p1391_p2  ;;  %p1297_p11 = scmp.lt.s32.totalorder %s1288_s27, %s1288_s27 }
   0xa   : > { %p1405_p5 = pnand %p1397_p3, %p1236_p4  ;;  %p1298_p12 = por %p1297_p11, %p1296_p10 }
   0xc   : > { %p1279_p6 = pneg %p1405_p5 }
   0xe   : > { %p1291_p8 = pnand %p1289_p7, %p1279_p6 }
  0x10   : > { %p1292_p9 = pneg %p1291_p8 }
  0x12   : > { %p1299_p13 = pnand %p1298_p12, %p1292_p9 }
  0x14   : > { %1302 = shalt.err (!%p1299_p13)
}
  0x15   : > { %s1347_s28 = smov 256   ;;  %s1348_s29 = smov 16  }
  0x16   : > { %1239 = dma.hbm_to_vmem [thread:$0]  (!%p1405_p5), %s1558_s1, 4096, %s171_s20, [#allocation3], %s1347_s28, %s1347_s28, %s1348_s29  }
  0x17   : > { %s1314_s7 = scalar_lea.vmem %s187_s25, 4096  ;;  %p1322_p7 = scmp.lt.s32.totalorder %s187_s25, %s187_s25 }
  0x18   : > { %p1315_p0 = scmp.ne.s32.totalorder %s187_s25, %s1314_s7  ;;  %p1323_p8 = scmp.lt.s32.totalorder %s1314_s7, %s1314_s7 }
  0x1a   : > { %p1317_p1 = pnand %p1315_p0, %p1279_p6  ;;  %p1324_p10 = por %p1323_p8, %p1322_p7 }
  0x1c   : > { %p1318_p4 = pneg %p1317_p1 }
  0x1e   : > { %p1325_p9 = pnand %p1324_p10, %p1318_p4 }
  0x20   : > { %1328 = shalt.err (!%p1325_p9)
}
  0x21   : > { %s1349_s8 = smov 128   ;;  %s1350_s9 = smov 8  }
  0x22   : > { %1242 = dma.hbm_to_vmem [thread:$0]  (!%p1405_p5), %s1560_s3, 4096, %s187_s25, [#allocation5], %s1349_s8, %s1349_s8, %s1350_s9  }
  0x23   : > { %215 = sbr.rel (%p1391_p2) target bundleno = 533 (0x215), region = 40 }
  0x28   : > { %1334 = dma.done.wait (%p1397_p3), [#allocation3], 4096  }
  0x29   : > { %1336 = vsyncadd (%p1397_p3), [#allocation3], 4294963200 }
  0x2a   : > { %1338 = dma.done.wait (%p1397_p3), [#allocation5], 4096  }
  0x2b   : > { %1340 = vsyncadd (%p1397_p3), [#allocation5], 4294963200  ;;  %s1168_s12 = sshll.u32 %s1159_s21, 1  ;;  %v1351_v0 = vmov 0.0   ;;  %v1352_v1 = vmov 1966171168   ;;  %v275_v3 = vlaneseq }
  0x2c   : > { %621 = vmatprep.mubr.f32.mxu0 %v1351_v0  ;;  %p250_p5 = scmp.lt.s32.totalorder %s1168_s12, 3  ;;  %v273_v2 = vunpack.c.l.s4 %v1352_v1  ;;  %v428_v4 = vld [vmem:[#allocation2 + $0xf8] sm:$0xff]  ;;  %v427_v5 = vld [vmem:[#allocation2 + $0xf0] sm:$0xff]  ;;  %v426_v6 = vld [vmem:[#allocation2 + $0xe8] sm:$0xff] }
  0x2d   : > { %557 = vmatprep.subr.mxu0 %v428_v4  ;;  %v425_v7 = vld [vmem:[#allocation2 + $0xe0] sm:$0xff]  ;;  %v424_v8 = vld [vmem:[#allocation2 + $0xd8] sm:$0xff]  ;;  %v423_v9 = vld [vmem:[#allocation2 + $0xd0] sm:$0xff]  ;;  %v1442_v11 = vshrl.u32 %v275_v3, 7 }
  0x2e   : > { %s1567_s12 = smov (!%p250_p5, %s1168_s12), 3  ;;  %558 = vmatpush1.msra.mxu0 %v427_v5  ;;  %v274_v10 = vunpack.c.0.s8 %v273_v2  ;;  %v422_v12 = vld [vmem:[#allocation2 + $0xc8] sm:$0xff]  ;;  %v421_v13 = vld [vmem:[#allocation2 + $0xc0] sm:$0xff]  ;;  %v420_v14 = vld [vmem:[#allocation2 + $0xb8] sm:$0xff] }
  0x2f   : > { %559 = vmatprep.subr.mxu0 %v426_v6  ;;  %s1183_s13 = sshll.u32 %s1567_s12, 4  ;;  %v419_v15 = vld [vmem:[#allocation2 + $0xb0] sm:$0xff]  ;;  %v418_v17 = vld [vmem:[#allocation2 + $0xa8] sm:$0xff]  ;;  %v417_v18 = vld [vmem:[#allocation2 + $0xa0] sm:$0xff]  ;;  %vm939_vm0 = vcmp.eq.s32.totalorder %v1442_v11, 0 }
  0x30   : > { %560 = vmatpush1.msra.mxu0 %v425_v7  ;;  %s1450_s16 = scalar_lea.vmem %s1557_s0, %s1183_s13  ;;  %v1453_v16 = vsub.s32 %v274_v10, %v1442_v11  ;;  %v416_v19 = vld [vmem:[#allocation2 + $0x98] sm:$0xff]  ;;  %v415_v21 = vld [vmem:[#allocation2 + $0x90] sm:$0xff]  ;;  %v414_v26 = vld [vmem:[#allocation2 + $0x88] sm:$0xff]  ;;  %s1523_s24 = scalar_lea.vmem %s1562_s5, %s1183_s13 }
  0x31   : > { %561 = vmatprep.subr.mxu0 %v424_v8  ;;  %v1456_v20 = vld [vmem:[%s1450_s16] sm:$0xff]  ;;  %v1185_v24 = vld.sshfl [vmem:[%s1450_s16 + $0x8] sm:$0x1 pattern:$0x75316420]  ;;  %v1464_v25 = vld [vmem:[%s1450_s16 + $0x10] sm:$0xff] }
  0x32   : > { %562 = vmatpush1.msra.mxu0 %v423_v9  ;;  %v271_v22 = vcombine.high %v1456_v20, %v1456_v20  ;;  %v278_v23 = vrot.slane %v1456_v20, %v1453_v16  ;;  %v334_v27 = vcombine.high %v1464_v25, %v1464_v25  ;;  %v341_v28 = vrot.slane %v1464_v25, %v1453_v16  ;;  %v413_v29 = vld [vmem:[#allocation2 + $0x80] sm:$0xff]  ;;  %v412_v34 = vld [vmem:[#allocation2 + $0x78] sm:$0xff]  ;;  %v411_v38 = vld [vmem:[#allocation2 + $0x70] sm:$0xff] }
  0x33   : > { %563 = vmatprep.subr.mxu0 %v422_v12  ;;  %v333_v33 = vrot.slane %v1185_v24, %v1453_v16  ;;  %v410_v42 = vld [vmem:[#allocation2 + $0x68] sm:$0xff]  ;;  %v409_v47 = vld [vmem:[#allocation2 + $0x60] sm:$0xff]  ;;  %v408_v52 = vld [vmem:[#allocation2 + $0x58] sm:$0xff] }
  0x34   : > { %564 = vmatpush1.msra.mxu0 %v421_v13  ;;  %v285_v30 = vrot.slane %v271_v22, %v1453_v16  ;;  %v286_v31 = vcombine.high %v278_v23, %v278_v23  ;;  %v294_v32 = vrot.slane %v278_v23, %v1453_v16  ;;  %v348_v35 = vrot.slane %v334_v27, %v1453_v16  ;;  %v407_v57 = vld [vmem:[#allocation2 + $0x50] sm:$0xff]  ;;  %v406_v62 = vld [vmem:[#allocation2 + $0x48] sm:$0xff]  ;;  %v405_v3 = vld [vmem:[#allocation2 + $0x40] sm:$0xff] }
  0x35   : > { %565 = vmatprep.subr.mxu0 %v420_v14  ;;  %v349_v36 = vcombine.high %v341_v28, %v341_v28  ;;  %v357_v37 = vrot.slane %v341_v28, %v1453_v16  ;;  %v1186_v8 = vld.sshfl [vmem:[%s1450_s16 + $0x18] sm:$0x1 pattern:$0x75316420]  ;;  %v403_v13 = vld [vmem:[#allocation2 + $0x30] sm:$0xff]  ;;  %v398_v28 = vld [vmem:[#allocation2 + $0x8] sm:$0xff] }
  0x36   : > { %566 = vmatpush1.msra.mxu0 %v419_v15  ;;  %v287_v39 = vcombine.high %v285_v30, %v285_v30  ;;  %v301_v40 = vrot.slane %v285_v30, %v1453_v16  ;;  %v308_v41 = vrot.slane %v286_v31, %v1453_v16  ;;  %v350_v43 = vcombine.high %v348_v35, %v348_v35  ;;  %v404_v9 = vld [vmem:[#allocation2 + $0x38] sm:$0xff]  ;;  %v402_v15 = vld [vmem:[#allocation2 + $0x28] sm:$0xff]  ;;  %v399_v27 = vld [vmem:[#allocation2 + $0x10] sm:$0xff] }
  0x37   : > { %567 = vmatprep.subr.mxu0 %v418_v17  ;;  %v364_v44 = vrot.slane %v348_v35, %v1453_v16  ;;  %v371_v45 = vrot.slane %v349_v36, %v1453_v16  ;;  %v379_v46 = vcombine.high %v357_v37, %v357_v37  ;;  %v490_v51 = vcombine.low %v333_v33, %v357_v37  ;;  %v725_v37 = vld [vmem:[#allocation4 + $0xf8] sm:$0xff] }
  0x38   : > { %568 = vmatpush1.msra.mxu0 %v417_v18  ;;  %v315_v48 = vrot.slane %v287_v39, %v1453_v16  ;;  %v441_v49 = vcombine.low %v294_v32, %v308_v41  ;;  %v1174_v50 = vcombine.high %v294_v32, %v308_v41  ;;  %v378_v53 = vrot.slane %v350_v43, %v1453_v16  ;;  %v724_v39 = vld [vmem:[#allocation4 + $0xf0] sm:$0xff]  ;;  %v723_v41 = vld [vmem:[#allocation4 + $0xe8] sm:$0xff]  ;;  %v722_v43 = vld [vmem:[#allocation4 + $0xe0] sm:$0xff] }
  0x39   : > { %569 = vmatprep.subr.mxu0 %v416_v19  ;;  %v380_v54 = vcombine.high %v364_v44, %v364_v44  ;;  %v381_v55 = vcombine.high %v371_v45, %v371_v45  ;;  %v491_v56 = vcombine.low %v371_v45, %v379_v46  ;;  %v500_v2 = vrot.slane %v490_v51, %v1453_v16  ;;  %v401_v19 = vld [vmem:[#allocation2 + $0x20] sm:$0xff]  ;;  %v721_v45 = vld [vmem:[#allocation4 + $0xd8] sm:$0xff]  ;;  %v720_v46 = vld [vmem:[#allocation4 + $0xd0] sm:$0xff] }
  0x3a   : > { %570 = vmatpush1.msra.mxu0 %v415_v21  ;;  %v443_v58 = vcombine.low %v301_v40, %v315_v48  ;;  %v1175_v59 = vcombine.high %v301_v40, %v315_v48  ;;  %v451_v60 = vrot.slane %v441_v49, %v1453_v16  ;;  %v458_v61 = vrot.slane %v1174_v50, %v1453_v16  ;;  %v708_v40 = vld [vmem:[#allocation4 + $0x70] sm:$0xff]  ;;  %v719_v48 = vld [vmem:[#allocation4 + $0xc8] sm:$0xff]  ;;  %v718_v50 = vld [vmem:[#allocation4 + $0xc0] sm:$0xff] }
  0x3b   : > { %571 = vmatprep.subr.mxu0 %v414_v26  ;;  %v492_v63 = vcombine.low %v381_v55, %v364_v44  ;;  %v493_v1 = vcombine.low %v378_v53, %v380_v54  ;;  %v507_v7 = vrot.slane %v491_v56, %v1453_v16  ;;  %v382_v17 = vcombine.high %v378_v53, %v378_v53  ;;  %v400_v26 = vld [vmem:[#allocation2 + $0x18] sm:$0xff]  ;;  %v706_v44 = vld [vmem:[#allocation4 + $0x60] sm:$0xff]  ;;  %v703_v49 = vld [vmem:[#allocation4 + $0x48] sm:$0xff] }
  0x3c   : > { %572 = vmatpush1.msra.mxu0 %v413_v29  ;;  %v465_v4 = vrot.slane %v443_v58, %v1453_v16  ;;  %v472_v5 = vrot.slane %v1175_v59, %v1453_v16  ;;  %v473_v6 = vcombine.low %v451_v60, %v458_v61  ;;  %v396_v18 = vrot.slane %v1186_v8, %v1453_v16  ;;  %v397_v29 = vld [vmem:[#allocation2] sm:$0xff]  ;;  %v701_v53 = vld [vmem:[#allocation4 + $0x38] sm:$0xff]  ;;  %v716_v54 = vld [vmem:[#allocation4 + $0xb0] sm:$0xff] }
  0x3d   : > { %573 = vmatprep.subr.mxu0 %v412_v34  ;;  %v514_v10 = vrot.slane %v492_v63, %v1453_v16  ;;  %v521_v12 = vrot.slane %v493_v1, %v1453_v16  ;;  %v522_v23 = vcombine.low %v500_v2, %v507_v7  ;;  %1187 = vmatprep.subr.mxu1 %v725_v37  ;;  %v702_v51 = vld [vmem:[#allocation4 + $0x40] sm:$0xff]  ;;  %v700_v55 = vld [vmem:[#allocation4 + $0x30] sm:$0xff]  ;;  %v715_v56 = vld [vmem:[#allocation4 + $0xa8] sm:$0xff]  ;;  %v437_v7 = vsub.s32 1, %v1442_v11 }
  0x3e   : > { %574 = vmatpush1.msra.mxu0 %v411_v38  ;;  %v474_v14 = vcombine.low %v465_v4, %v472_v5  ;;  %v481_v21 = vrot.slane %v473_v6, %v1453_v16  ;;  %v539_v33 = vcombine.low %v382_v17, %v396_v18  ;;  %v709_v38 = vld [vmem:[#allocation4 + $0x78] sm:$0xff]  ;;  %v714_v58 = vld [vmem:[#allocation4 + $0xa0] sm:$0xff]  ;;  %v696_v63 = vld [vmem:[#allocation4 + $0x10] sm:$0xff]  ;;  %v433_v5 = vsub.s32 0, %v1442_v11 }
  0x3f   : > { %575 = vmatprep.subr.mxu0 %v410_v42  ;;  %v523_v24 = vcombine.low %v514_v10, %v521_v12  ;;  %v530_v31 = vrot.slane %v522_v23, %v1453_v16  ;;  %1188 = vmatpush3.msra.mxu1 %v709_v38  ;;  %v707_v42 = vld [vmem:[#allocation4 + $0x68] sm:$0xff]  ;;  %v698_v59 = vld [vmem:[#allocation4 + $0x20] sm:$0xff]  ;;  %v713_v60 = vld [vmem:[#allocation4 + $0x98] sm:$0xff] }
  0x40   : > { %576 = vmatpush1.msra.mxu0 %v409_v47  ;;  %v488_v22 = vrot.slane %v474_v14, %v1453_v16  ;;  %v546_v35 = vrot.slane %v539_v33, %v1453_v16  ;;  %1189 = vmatprep.subr.mxu1 %v724_v39  ;;  %v704_v47 = vld [vmem:[#allocation4 + $0x50] sm:$0xff]  ;;  %v697_v61 = vld [vmem:[#allocation4 + $0x18] sm:$0xff]  ;;  %v711_v1 = vld [vmem:[#allocation4 + $0x88] sm:$0xff] }
  0x41   : > { %577 = vmatprep.subr.mxu0 %v408_v52  ;;  %v537_v32 = vrot.slane %v523_v24, %v1453_v16  ;;  %1190 = vmatpush3.msra.mxu1 %v708_v40  ;;  %v717_v52 = vld [vmem:[#allocation4 + $0xb8] sm:$0xff]  ;;  %v695_v2 = vld [vmem:[#allocation4 + $0x8] sm:$0xff]  ;;  %v694_v4 = vld [vmem:[#allocation4] sm:$0xff] }
  0x42   : > { %578 = vmatpush1.msra.mxu0 %v407_v57  ;;  %v489_v30 = vcombine.low %v481_v21, %v488_v22  ;;  %v553_v36 = vrot.slane %v546_v35, %v1453_v16  ;;  %1191 = vmatprep.subr.mxu1 %v723_v41  ;;  %v699_v57 = vld [vmem:[#allocation4 + $0x28] sm:$0xff]  ;;  %v429_v6 = vld [vmem:[%s1559_s2] sm:$0x3] }
  0x43   : > { %579 = vmatprep.subr.mxu0 %v406_v62  ;;  %v538_v34 = vcombine.low %v530_v31, %v537_v32  ;;  %1192 = vmatpush3.msra.mxu1 %v707_v42  ;;  %v712_v62 = vld [vmem:[#allocation4 + $0x90] sm:$0xff]  ;;  %v434_v8 = vrot.slane %v429_v6, %v433_v5 }
  0x44   : > { %580 = vmatpush1.msra.mxu0 %v405_v3  ;;  %1193 = vmatprep.subr.mxu1 %v722_v43  ;;  %v710_v3 = vld [vmem:[#allocation4 + $0x80] sm:$0xff] }
  0x45   : > { %581 = vmatprep.subr.mxu0 %v404_v9  ;;  %1194 = vmatpush3.msra.mxu1 %v706_v44  ;;  %v438_v9 = vrot.slane %v429_v6, %v437_v7 }
  0x46   : > { %582 = vmatpush1.msra.mxu0 %v403_v13  ;;  %1195 = vmatprep.subr.mxu1 %v721_v45 }
  0x47   : > { %583 = vmatprep.subr.mxu0 %v402_v15 }
  0x48   : > { %584 = vmatpush1.msra.mxu0 %v401_v19 }
  0x49   : > { %585 = vmatprep.subr.mxu0 %v400_v26 }
  0x4a   : > { %586 = vmatpush1.msra.mxu0 %v399_v27 }
  0x4b   : > { %587 = vmatprep.subr.mxu0 %v398_v28 }
  0x4c   : > { %588 = vmatpush1.msra.mxu0 %v397_v29 }
  0x4d   : > { %622 = vmatmul.mubr.f32.vlgmr.msra.gmra.mxu0 %v489_v30 }
  0x4e   : > { %627 = vmatprep.mubr.f32.mxu0 %v1351_v0 }
  0x51   : > { %628 = vmatmul.mubr.f32.gmra.mxu0 %v538_v34 }
  0x52   : > { %633 = vmatprep.mubr.f32.mxu0 %v1351_v0  ;;  %v705_v0 = vld [vmem:[#allocation4 + $0x58] sm:$0xff] }
  0x53   : > { %1196 = vmatpush3.msra.mxu1 %v705_v0 }
  0x54   : > { %1197 = vmatprep.subr.mxu1 %v720_v46 }
  0x55   : > { %634 = vmatmul.mubr.f32.gmra.mxu0 %v553_v36  ;;  %1198 = vmatpush3.msra.mxu1 %v704_v47 }
  0x56   : > { %1199 = vmatprep.subr.mxu1 %v719_v48 }
  0x57   : > { %1200 = vmatpush3.msra.mxu1 %v703_v49 }
  0x58   : > { %1201 = vmatprep.subr.mxu1 %v718_v50 }
  0x59   : > { %1202 = vmatpush3.msra.mxu1 %v702_v51 }
  0x5a   : > { %1203 = vmatprep.subr.mxu1 %v717_v52 }
  0x5b   : > { %1204 = vmatpush3.msra.mxu1 %v701_v53 }
  0x5c   : > { %1205 = vmatprep.subr.mxu1 %v716_v54 }
  0x5d   : > { %1206 = vmatpush3.msra.mxu1 %v700_v55 }
  0x5e   : > { %1207 = vmatprep.subr.mxu1 %v715_v56 }
  0x5f   : > { %1208 = vmatpush3.msra.mxu1 %v699_v57 }
  0x60   : > { %1209 = vmatprep.subr.mxu1 %v714_v58 }
  0x61   : > { %1210 = vmatpush3.msra.mxu1 %v698_v59 }
  0x62   : > { %1211 = vmatprep.subr.mxu1 %v713_v60 }
  0x63   : > { %1212 = vmatpush3.msra.mxu1 %v697_v61 }
  0x64   : > { %1213 = vmatprep.subr.mxu1 %v712_v62 }
  0x65   : > { %1214 = vmatpush3.msra.mxu1 %v696_v63 }
  0x66   : > { %1215 = vmatprep.subr.mxu1 %v711_v1 }
  0x67   : > { %1216 = vmatpush3.msra.mxu1 %v695_v2 }
  0x68   : > { %1217 = vmatprep.subr.mxu1 %v710_v3 }
  0x69   : > { %1218 = vmatpush3.msra.mxu1 %v694_v4 }
 0x10d   : > { %v623_v10 = vpop.f32.mrf.mxu0 }
 0x10e   : > { %v624_v12 = vadd.f32 %v623_v10, %v434_v8 }
 0x10f   : > { %v625_v13 = vpop.f32.mrf.mxu0 }
 0x110   : > { %v640_v14 = vmul.f32 %v624_v12, %v624_v12  ;;  %v626_v15 = vadd.f32 %v625_v13, %v438_v9 }
 0x111   : > { %v629_v17 = vpop.f32.mrf.mxu0 }
 0x112   : > { %v646_v18 = vmul.f32 %v640_v14, %v624_v12  ;;  %v641_v19 = vmul.f32 %v626_v15, %v626_v15  ;;  %v630_v21 = vadd.f32 %v629_v17, %v434_v8 }
 0x113   : > { %v631_v22 = vpop.f32.mrf.mxu0 }
 0x114   : > { %v652_v23 = vmul.f32 0.044715, %v646_v18  ;;  %v647_v24 = vmul.f32 %v641_v19, %v626_v15  ;;  %v642_v26 = vmul.f32 %v630_v21, %v630_v21  ;;  %v632_v27 = vadd.f32 %v631_v22, %v438_v9 }
 0x115   : > { %v635_v28 = vpop.f32.mrf.mxu0 }
 0x116   : > { %v658_v29 = vadd.f32 %v652_v23, %v624_v12  ;;  %v648_v30 = vmul.f32 %v642_v26, %v630_v21  ;;  %v643_v31 = vmul.f32 %v632_v27, %v632_v27  ;;  %v636_v32 = vadd.f32 %v635_v28, %v434_v8 }
 0x117   : > { %v637_v33 = vpop.f32.mrf.mxu0  ;;  %v653_v34 = vmul.f32 0.044715, %v647_v24 }
 0x118   : > { %v664_v35 = vmul.f32 0.7978846, %v658_v29  ;;  %v654_v36 = vmul.f32 0.044715, %v648_v30  ;;  %v649_v37 = vmul.f32 %v643_v31, %v632_v27  ;;  %v644_v38 = vmul.f32 %v636_v32, %v636_v32 }
 0x119   : > { %v638_v39 = vadd.f32 %v637_v33, %v438_v9  ;;  %v659_v40 = vadd.f32 %v653_v34, %v626_v15 }
 0x11a   : > { %1265 = vtanh.f32 %v664_v35  ;;  %v660_v41 = vadd.f32 %v654_v36, %v630_v21  ;;  %v655_v42 = vmul.f32 0.044715, %v649_v37  ;;  %v650_v43 = vmul.f32 %v644_v38, %v636_v32 }
 0x11b   : > { %v645_v44 = vmul.f32 %v638_v39, %v638_v39  ;;  %v665_v45 = vmul.f32 0.7978846, %v659_v40 }
 0x11c   : > { %v666_v0 = vmul.f32 0.7978846, %v660_v41  ;;  %v661_v46 = vadd.f32 %v655_v42, %v632_v27  ;;  %v656_v47 = vmul.f32 0.044715, %v650_v43 }
 0x11d   : > { %v651_v48 = vmul.f32 %v645_v44, %v638_v39  ;;  %1267 = vtanh.f32 %v665_v45 }
 0x11e   : > { %1269 = vtanh.f32 %v666_v0  ;;  %v667_v49 = vmul.f32 0.7978846, %v661_v46  ;;  %v662_v50 = vadd.f32 %v656_v47, %v636_v32 }
 0x11f   : > { %v657_v51 = vmul.f32 0.044715, %v651_v48 }
 0x120   : > { %1271 = vtanh.f32 %v667_v49  ;;  %v668_v52 = vmul.f32 0.7978846, %v662_v50 }
 0x121   : > { %v663_v53 = vadd.f32 %v657_v51, %v638_v39 }
 0x122   : > { %1273 = vtanh.f32 %v668_v52 }
 0x123   : > { %v669_v54 = vmul.f32 0.7978846, %v663_v53 }
 0x125   : > { %1275 = vtanh.f32 %v669_v54 }
 0x127   : > { %v1266_v55 = vpop.eup %1265 }
 0x128   : > { %v676_v56 = vadd.f32 1.0, %v1266_v55 }
 0x12a   : > { %v1268_v57 = vpop.eup %1267  ;;  %v682_v60 = vmul.f32 0.5, %v676_v56 }
 0x12b   : > { %v1270_v58 = vpop.eup %1269  ;;  %v677_v59 = vadd.f32 1.0, %v1268_v57 }
 0x12c   : > { %v678_v61 = vadd.f32 1.0, %v1270_v58  ;;  %v688_v4 = vmul.f32 %v682_v60, %v624_v12  ;;  %v1176_v12 = vld [vmem:[%s1561_s4] ss:$0 sm:$0xff] }
 0x12d   : > { %v1272_v62 = vpop.eup %1271  ;;  %v683_v63 = vmul.f32 0.5, %v677_v59 }
 0x12e   : > { %v679_v1 = vadd.f32 1.0, %v1272_v62  ;;  %v684_v6 = vmul.f32 0.5, %v678_v61 }
 0x12f   : > { %v1274_v2 = vpop.eup %1273  ;;  %v689_v3 = vmul.f32 %v683_v63, %v626_v15 }
 0x130   : > { %v685_v5 = vmul.f32 0.5, %v679_v1  ;;  %v680_v7 = vadd.f32 1.0, %v1274_v2  ;;  %v690_v13 = vmul.f32 %v684_v6, %v630_v21 }
 0x131   : > { %797 = vmatprep.mubr.f32.mxu1 %v689_v3 }
 0x132   : > { %v1276_v8 = vpop.eup %1275  ;;  %798 = vmatmul.mubr.f32.vlgmr.msra.gmra.mxu1 %v688_v4  ;;  %v691_v9 = vmul.f32 %v685_v5, %v632_v27  ;;  %v686_v14 = vmul.f32 0.5, %v680_v7 }
 0x133   : > { %v681_v10 = vadd.f32 1.0, %v1276_v8 }
 0x134   : > { %802 = vmatprep.mubr.f32.mxu1 %v691_v9  ;;  %v692_v19 = vmul.f32 %v686_v14, %v636_v32 }
 0x135   : > { %v687_v17 = vmul.f32 0.5, %v681_v10 }
 0x136   : > { %803 = vmatmul.mubr.f32.gmra.mxu1 %v690_v13 }
 0x137   : > { %v693_v18 = vmul.f32 %v687_v17, %v638_v39 }
 0x139   : > { %807 = vmatprep.mubr.f32.mxu1 %v693_v18 }
 0x13a   : > { %808 = vmatmul.mubr.f32.gmra.mxu1 %v692_v19 }
 0x1f2   : > { %v1219_v22 = vpop.f32.mrf.mxu1 }
 0x1f4   : > { %v1220_v15 = vpop.f32.mrf.mxu1 }
 0x1f5   : > { %v1221_v23 = vadd.f32 %v1220_v15, %v1219_v22 }
 0x1f6   : > { %v1222_v24 = vpop.f32.mrf.mxu1 }
 0x1f7   : > { %v800_v26 = vadd.f32 %v1221_v23, %v1176_v12 }
 0x1f8   : > { %v1223_v27 = vpop.f32.mrf.mxu1 }
 0x1f9   : > { %v816_v28 = vcombine.high %v800_v26, %v800_v26  ;;  %v823_v21 = vrot.slane %v800_v26, %v1453_v16  ;;  %v1224_v29 = vadd.f32 %v1223_v27, %v1222_v24 }
 0x1fa   : > { %v1225_v30 = vpop.f32.mrf.mxu1 }
 0x1fb   : > { %v830_v31 = vrot.slane %v816_v28, %v1453_v16  ;;  %v831_v32 = vcombine.high %v823_v21, %v823_v21  ;;  %v805_v33 = vadd.f32 %v1224_v29, %v1176_v12  ;;  %v839_v36 = vrot.slane %v823_v21, %v1453_v16 }
 0x1fc   : > { %v1226_v34 = vpop.f32.mrf.mxu1 }
 0x1fd   : > { %v832_v35 = vcombine.high %v830_v31, %v830_v31  ;;  %v853_v37 = vrot.slane %v831_v32, %v1453_v16  ;;  %v865_v38 = vcombine.high %v805_v33, %v805_v33  ;;  %v846_v39 = vrot.slane %v830_v31, %v1453_v16 }
 0x1fe   : > { %v872_v40 = vrot.slane %v805_v33, %v1453_v16  ;;  %v1227_v41 = vadd.f32 %v1226_v34, %v1225_v30 }
 0x1ff   : > { %v860_v42 = vrot.slane %v832_v35, %v1453_v16  ;;  %v941_v43 = vcombine.low %v839_v36, %v853_v37  ;;  %v1177_v44 = vcombine.high %v839_v36, %v853_v37  ;;  %v879_v45 = vrot.slane %v865_v38, %v1453_v16 }
 0x200   : > { %v880_v0 = vcombine.high %v872_v40, %v872_v40  ;;  %v888_v46 = vrot.slane %v872_v40, %v1453_v16  ;;  %v810_v47 = vadd.f32 %v1227_v41, %v1176_v12 }
 0x201   : > { %v943_v48 = vcombine.low %v846_v39, %v860_v42  ;;  %v1178_v49 = vcombine.high %v846_v39, %v860_v42  ;;  %v951_v50 = vrot.slane %v941_v43, %v1453_v16  ;;  %v958_v51 = vrot.slane %v1177_v44, %v1453_v16 }
 0x202   : > { %v881_v52 = vcombine.high %v879_v45, %v879_v45  ;;  %v895_v53 = vrot.slane %v879_v45, %v1453_v16  ;;  %v902_v54 = vrot.slane %v880_v0, %v1453_v16  ;;  %v910_v55 = vcombine.high %v888_v46, %v888_v46 }
 0x203   : > { %v965_v56 = vrot.slane %v943_v48, %v1453_v16  ;;  %v972_v57 = vrot.slane %v1178_v49, %v1453_v16  ;;  %v973_v58 = vcombine.low %v951_v50, %v958_v51  ;;  %v996_v59 = vrot.slane %v888_v46, %v1453_v16 }
 0x204   : > { %v909_v60 = vrot.slane %v881_v52, %v1453_v16  ;;  %v911_v61 = vcombine.high %v895_v53, %v895_v53  ;;  %v912_v62 = vcombine.high %v902_v54, %v902_v54  ;;  %v1004_v1 = vcombine.low %v902_v54, %v910_v55 }
 0x205   : > { %v974_v63 = vcombine.low %v965_v56, %v972_v57  ;;  %1179 = vst.sshfl [vmem:[%s1523_s24 + $0x8] sm:$0x1 pattern:$0x73625140] %v996_v59  ;;  %v920_v2 = vrot.slane %v810_v47, %v1453_v16  ;;  %v981_v6 = vrot.slane %v973_v58, %v1453_v16 }
 0x206   : > { %v1005_v3 = vcombine.low %v912_v62, %v895_v53  ;;  %v1006_v4 = vcombine.low %v909_v60, %v911_v61  ;;  %v913_v5 = vcombine.high %v909_v60, %v909_v60  ;;  %v1014_v14 = vrot.slane %v1004_v1, %v1453_v16 }
 0x207   : > { %v988_v7 = vrot.slane %v974_v63, %v1453_v16  ;;  %v921_v8 = vcombine.high %v920_v2, %v920_v2  ;;  %v928_v9 = vrot.slane %v920_v2, %v1453_v16 }
 0x208   : > { %v1021_v10 = vrot.slane %v1005_v3, %v1453_v16  ;;  %v1028_v19 = vrot.slane %v1006_v4, %v1453_v16 }
 0x209   : > { %v989_v13 = vcombine.low %v981_v6, %v988_v7  ;;  %v935_v17 = vrot.slane %v921_v8, %v1453_v16  ;;  %v1007_v18 = vcombine.low %v913_v5, %v928_v9 }
 0x20a   : > { %v1036_v12 = vcombine.low %v1014_v14, %v1021_v10 }
 0x20b   : > { %v1071_v22 = vsel %vm939_vm0, %v1456_v20, %v989_v13  ;;  %v1035_v15 = vrot.slane %v1007_v18, %v1453_v16  ;;  %v1059_v23 = vrot.slane %v935_v17, %v1453_v16 }
 0x20c   : > { %1075 = vst [vmem:[%s1523_s24] sm:$0xff] %v1071_v22  ;;  %v1044_v26 = vrot.slane %v1036_v12, %v1453_v16 }
 0x20d   : > { %v1037_v24 = vcombine.low %v1028_v19, %v1035_v15  ;;  %1180 = vst.sshfl [vmem:[%s1523_s24 + $0x18] sm:$0x1 pattern:$0x73625140] %v1059_v23 }
 0x20f   : > { %v1051_v27 = vrot.slane %v1037_v24, %v1453_v16 }
 0x211   : > { %v1052_v28 = vcombine.low %v1044_v26, %v1051_v27 }
 0x213   : > { %v1073_v21 = vsel %vm939_vm0, %v1464_v25, %v1052_v28 }
 0x214   : > { %1077 = vst [vmem:[%s1523_s24 + $0x10] sm:$0xff] %v1073_v21 }
 0x215 PF: > { %s17_s18 = sadd.s32 1, %s1343_s18  }
 0x216   : > { %p14_p2 = scmp.ge.s32.totalorder %s17_s18, 4  }
 0x218   :  { %16 = sbr.rel (!%p14_p2) target bundleno = 2 (0x2), region = 79 }
 0x21d   :  { %1103 = vsyncpa [#allocation3], 1 }
 0x21e   :  { %1105 = vsyncpa [#allocation3 + $0x1], 1 }
 0x21f   :  { %1106 = vsyncpa [#allocation5], 1 }

</bundles_post_ra>
